<compile_context>
chip_gen: v7x
topology: tpu7x:2x2x1
jax: 0.10.0
libtpu: 0.0.40
codegen_flags: <defaults>
</compile_context>

<pallas_src>
import jax
import jax.numpy as jnp
from jax.experimental import pallas as pl
from jax.experimental.pallas import tpu as pltpu


def _conv_bn_relu_kernel(x_ref, w_ref, b_ref, o_ref):
    # x_ref: [M, C_in]     f32  (M = N*H*W, rows ordered (n, h, w))
    # w_ref: [C_in, C_out] bf16 (BN scale already folded, pre-transposed)
    # b_ref: [1, C_out]    f32  (folded BN bias = beta - mean * scale)
    # o_ref: [M, C_out]    f32  (lane-dense: C_out on the 128-lane axis)
    x = x_ref[...].astype(jnp.bfloat16)          # in-VMEM cast, one VPU pass
    y = jnp.dot(x, w_ref[...], preferred_element_type=jnp.float32)
    o_ref[...] = jnp.maximum(y + b_ref[...], 0.0)


def fold_bn_params(weight_oi, gamma, beta, running_mean, running_var, eps=1e-3):
    """One-time fold of eval-mode BatchNorm into the 1x1 conv weight.

    weight_oi: [C_out, C_in] (the 1x1 conv kernel squeezed to 2D).
    Returns (w_t_bf16 [C_in, C_out], bias [1, C_out] f32).  Call once at init
    so the fold / transpose / bf16 cast stay off the per-call path.
    """
    scale = gamma / jnp.sqrt(running_var + eps)                   # [C_out]
    bias = beta - running_mean * scale                            # [C_out]
    w_folded = weight_oi.astype(jnp.float32) * scale[:, None]     # [C_out, C_in]
    w_t_bf16 = jnp.transpose(w_folded).astype(jnp.bfloat16)       # [C_in, C_out]
    return w_t_bf16, bias.reshape(1, -1).astype(jnp.float32)


def conv2d_bn_relu(x_nchw, w_t_bf16, bias_1c):
    """x_nchw: [N, C_in, H, W] f32; w_t_bf16: [C_in, C_out]; bias_1c: [1, C_out]."""
    N, C_in, H, W = x_nchw.shape
    C_out = w_t_bf16.shape[1]
    M = N * H * W

    # NCHW -> [M, C_in]; rows ordered (n, h, w).  36 KB transpose, trivial.
    x2d = jnp.transpose(x_nchw, (0, 2, 3, 1)).reshape(M, C_in)

    cost = pl.CostEstimate(
        flops=2 * M * C_in * C_out,
        transcendentals=0,
        bytes_accessed=(x2d.size * 4 + w_t_bf16.size * 2
                        + bias_1c.size * 4 + M * C_out * 4),
    )

    out2d = pl.pallas_call(
        _conv_bn_relu_kernel,
        out_shape=jax.ShapeDtypeStruct((M, C_out), jnp.float32),
        in_specs=[
            pl.BlockSpec(memory_space=pltpu.MemorySpace.VMEM),
            pl.BlockSpec(memory_space=pltpu.MemorySpace.VMEM),
            pl.BlockSpec(memory_space=pltpu.MemorySpace.VMEM),
        ],
        out_specs=pl.BlockSpec(memory_space=pltpu.MemorySpace.VMEM),
        cost_estimate=cost,
    )(x2d, w_t_bf16, bias_1c)

    # [M, C_out] -> NCHW to match the PyTorch module's output layout.
    return out2d.reshape(N, H, W, C_out).transpose(0, 3, 1, 2)


if __name__ == "__main__":
    N, C_in, H, W = 1, 184, 7, 7
    C_out = 1104
    eps = 1e-3

    key = jax.random.PRNGKey(0)
    kx, kw, kg, kb, km, kv = jax.random.split(key, 6)

    # Deterministic synthetic parameters (shapes match the PyTorch module).
    x = jax.random.normal(kx, (N, C_in, H, W), dtype=jnp.float32)
    weight = jax.random.normal(kw, (C_out, C_in), dtype=jnp.float32) * 0.05
    gamma = 1.0 + 0.1 * jax.random.normal(kg, (C_out,), dtype=jnp.float32)
    beta = 0.1 * jax.random.normal(kb, (C_out,), dtype=jnp.float32)
    running_mean = 0.1 * jax.random.normal(km, (C_out,), dtype=jnp.float32)
    running_var = jax.random.uniform(kv, (C_out,), dtype=jnp.float32,
                                     minval=0.5, maxval=1.5)

    # Init-time (hoisted) weight fold.
    w_t_bf16, bias_1c = fold_bn_params(weight, gamma, beta,
                                       running_mean, running_var, eps)
    w_t_bf16 = jax.block_until_ready(w_t_bf16)
    bias_1c = jax.block_until_ready(bias_1c)

    fused = jax.jit(conv2d_bn_relu)
    out = fused(x, w_t_bf16, bias_1c)
    out = jax.block_until_ready(out)

    # Pure-JAX f32 reference (eval-mode BN).  bf16 weight/activation in the
    # kernel => loosened tolerance vs the f32 reference.
    x2d = jnp.transpose(x, (0, 2, 3, 1)).reshape(-1, C_in)
    ref = x2d @ weight.T
    ref = (ref - running_mean) / jnp.sqrt(running_var + eps) * gamma + beta
    ref = jnp.maximum(ref, 0.0).reshape(N, H, W, C_out).transpose(0, 3, 1, 2)

    assert out.shape == (N, C_out, H, W)
    assert jnp.allclose(out, ref, atol=5e-2, rtol=5e-2), float(
        jnp.max(jnp.abs(out - ref)))

    print("KERNEL_OK")
</pallas_src>

<mosaic_0001>
module attributes {stable_mosaic.version = 11 : i64} {
  func.func @_conv_bn_relu_kernel(%arg0: memref<49x184xf32, #tpu.memory_space<vmem>>, %arg1: memref<184x1104xbf16, #tpu.memory_space<vmem>>, %arg2: memref<1x1104xf32, #tpu.memory_space<vmem>>, %arg3: memref<49x1104xf32, #tpu.memory_space<vmem>>) attributes {dimension_semantics = [], scalar_prefetch = 0 : i64, scratch_operands = 0 : i64, tpu.core_type = #tpu.core_type<tc>} {
    %c0 = arith.constant 0 : index
    %c0_0 = arith.constant 0 : index
    %0 = vector.load %arg0[%c0, %c0_0] : memref<49x184xf32, #tpu.memory_space<vmem>>, vector<49x184xf32>
    %1 = arith.truncf %0 : vector<49x184xf32> to vector<49x184xbf16>
    %c0_1 = arith.constant 0 : index
    %c0_2 = arith.constant 0 : index
    %2 = vector.load %arg1[%c0_1, %c0_2] : memref<184x1104xbf16, #tpu.memory_space<vmem>>, vector<184x1104xbf16>
    %cst = arith.constant dense<0.000000e+00> : vector<49x1104xf32>
    %3 = tpu.matmul %1, %2, %cst {dimension_numbers = #tpu.dot_dimension_numbers<[1], [0], [0], [1], [0, 0, 1, 1], [], []>} : vector<49x184xbf16>, vector<184x1104xbf16>, vector<49x1104xf32> -> vector<49x1104xf32>
    %c0_3 = arith.constant 0 : index
    %c0_4 = arith.constant 0 : index
    %4 = vector.load %arg2[%c0_3, %c0_4] : memref<1x1104xf32, #tpu.memory_space<vmem>>, vector<1x1104xf32>
    %5 = vector.broadcast %4 : vector<1x1104xf32> to vector<49x1104xf32>
    %6 = arith.addf %3, %5 : vector<49x1104xf32>
    %cst_5 = arith.constant 0.000000e+00 : f32
    %7 = vector.broadcast %cst_5 : f32 to vector<49x1104xf32>
    %8 = arith.maximumf %6, %7 : vector<49x1104xf32>
    %c0_6 = arith.constant 0 : index
    %c0_7 = arith.constant 0 : index
    %9 = vector.load %arg3[%c0_6, %c0_7] : memref<49x1104xf32, #tpu.memory_space<vmem>>, vector<49x1104xf32>
    tpu.vector_store %arg3[%c0_6, %c0_7], %8 {strides = array<i32>} : memref<49x1104xf32, #tpu.memory_space<vmem>>, vector<49x1104xf32>,
    return
  }
}

</mosaic_0001>

<bundles_post_ra>
// kernel: conv2d_bn_relu.1
= control target key start
LH: loop header
LB: loop body
LE: loop exit
PB: predicated region body
PF: predicated region fallthrough
CT: control target
= control target key end

     0   :  { %8 = vsyncpa [#allocation3], 0  ;;  %s1603_s12 = smov [#allocation2]   ;;  %s2083_s0 = inlined_call_operand.vmem [shape: f32[49,184], index: 0, kind: input, shape index: {}]   ;;  %s2084_s1 = inlined_call_operand.hbm [shape: bf16[184,1104], index: 1, kind: input, shape index: {}]   ;;  %s2085_s2 = inlined_call_operand.vmem [shape: f32[1,1104], index: 2, kind: input, shape index: {}]   ;;  %s2086_s3 = inlined_call_operand.vmem [shape: f32[49,1104], index: 3, kind: output, shape index: {}]  }
   0x1   :  { %s16_s13 = sshll.u32 %s1603_s12, 4  ;;  %s1579_s16 = scalar_lea.hbm %s2084_s1, 13248  ;;  %s17_s13 = int_to_ptr.vmem [resolvable:$true] %s16_s13 }
   0x2   :  { %p1580_p0 = scmp.ne.s32.totalorder %s2084_s1, %s1579_s16  ;;  %p1583_p1 = scmp.lt.u32.totalorder %s1579_s16, %s2084_s1 }
   0x4   :  { %p1585_p2 = pnand %p1583_p1, %p1580_p0 }
   0x6   :  { %1588 = shalt.err (!%p1585_p2)
}
   0x7   :  { %s1589_s21 = scalar_lea.vmem %s17_s13, 13248  ;;  %p1594_p4 = scmp.lt.s32.totalorder %s17_s13, %s17_s13 }
   0x8   :  { %p1590_p3 = scmp.ne.s32.totalorder %s17_s13, %s1589_s21  ;;  %p1595_p5 = scmp.lt.s32.totalorder %s1589_s21, %s1589_s21 }
   0xa   :  { %p1596_p6 = por %p1595_p5, %p1594_p4 }
   0xc   :  { %p1597_p7 = pnand %p1596_p6, %p1590_p3 }
   0xe   :  { %1600 = shalt.err (!%p1597_p7)
}
   0xf   :  { %s1604_s22 = smov 576   ;;  %s1605_s23 = smov 36  }
  0x10   :  { %22 = dma.hbm_to_vmem [thread:$0]  %s2084_s1, 13248, %s17_s13, [#allocation3], %s1604_s22, %s1604_s22, %s1605_s23  }
  0x11   :  { %1601 = dma.done.wait [#allocation3], 13248  }
  0x12   :  { %1602 = vsyncadd [#allocation3], 4294954048  ;;  %v1427_v0 = vld [vmem:[#allocation2 + $0x4] ss:$36 sps:$4 sm:$0xff]   ;;  %v1429_v1 = vld [vmem:[#allocation2 + $0xc] ss:$36 sps:$4 sm:$0xff]  }
  0x13   :  { %785 = vmatprep.subr.bf16.mxu0 %v1427_v0  ;;  %v1431_v2 = vld [vmem:[#allocation2] ss:$36 sps:$4 sm:$0xff]   ;;  %v1432_v3 = vld [vmem:[#allocation2 + $0x8] ss:$36 sps:$4 sm:$0xff]   ;;  %856 = vmatprep.subr.bf16.mxu1 %v1429_v1  ;;  %v1435_v5 = vld [vmem:[#allocation2 + $0x54] ss:$36 sps:$4 sm:$0xff]  }
  0x14   :  { %v1433_v4 = vld [vmem:[#allocation2 + $0x4c] ss:$36 sps:$4 sm:$0xff]   ;;  %786 = vmatpush1.bf16.msra.mxu0 %v1431_v2  ;;  %857 = vmatpush1.bf16.msra.mxu1 %v1432_v3  ;;  %v1439_v8 = vld [vmem:[#allocation2 + $0x94] ss:$36 sps:$4 sm:$0xff]   ;;  %v1441_v9 = vld [vmem:[#allocation2 + $0x9c] ss:$36 sps:$4 sm:$0xff]  }
  0x15   :  { %v1437_v6 = vld [vmem:[#allocation2 + $0x48] ss:$36 sps:$4 sm:$0xff]   ;;  %787 = vmatprep.subr.bf16.mxu0 %v1433_v4  ;;  %v1438_v7 = vld [vmem:[#allocation2 + $0x50] ss:$36 sps:$4 sm:$0xff]   ;;  %858 = vmatprep.subr.bf16.mxu1 %v1435_v5  ;;  %v1444_v11 = vld [vmem:[#allocation2 + $0x98] ss:$36 sps:$4 sm:$0xff]  }
  0x16   :  { %v1443_v10 = vld [vmem:[#allocation2 + $0x90] ss:$36 sps:$4 sm:$0xff]   ;;  %v1445_v12 = vld [vmem:[#allocation2 + $0xdc] ss:$36 sps:$4 sm:$0xff]   ;;  %v1447_v13 = vld [vmem:[#allocation2 + $0xe4] ss:$36 sps:$4 sm:$0xff]  }
  0x17   :  { %v1449_v14 = vld [vmem:[#allocation2 + $0xd8] ss:$36 sps:$4 sm:$0xff]   ;;  %v1450_v15 = vld [vmem:[#allocation2 + $0xe0] ss:$36 sps:$4 sm:$0xff]   ;;  %v1453_v17 = vld [vmem:[#allocation2 + $0x12c] ss:$36 sps:$4 sm:$0xff]  }
  0x18   :  { %788 = vmatpush1.bf16.msra.mxu0 %v1437_v6  ;;  %859 = vmatpush1.bf16.msra.mxu1 %v1438_v7  ;;  %v1451_v16 = vld [vmem:[#allocation2 + $0x124] ss:$36 sps:$4 sm:$0xff]   ;;  %v1457_v20 = vld [vmem:[#allocation2 + $0x16c] ss:$36 sps:$4 sm:$0xff]   ;;  %v1459_v21 = vld [vmem:[#allocation2 + $0x174] ss:$36 sps:$4 sm:$0xff]  }
  0x19   :  { %789 = vmatprep.subr.bf16.mxu0 %v1439_v8  ;;  %860 = vmatprep.subr.bf16.mxu1 %v1441_v9  ;;  %v1455_v18 = vld [vmem:[#allocation2 + $0x120] ss:$36 sps:$4 sm:$0xff]   ;;  %v1456_v19 = vld [vmem:[#allocation2 + $0x128] ss:$36 sps:$4 sm:$0xff]   ;;  %v1462_v23 = vld [vmem:[#allocation2 + $0x170] ss:$36 sps:$4 sm:$0xff]  }
  0x1a   :  { %v1461_v22 = vld [vmem:[#allocation2 + $0x168] ss:$36 sps:$4 sm:$0xff]   ;;  %v1463_v24 = vld [vmem:[#allocation2 + $0x1b4] ss:$36 sps:$4 sm:$0xff]   ;;  %v1465_v25 = vld [vmem:[#allocation2 + $0x1bc] ss:$36 sps:$4 sm:$0xff]  }
  0x1b   :  { %v1467_v26 = vld [vmem:[#allocation2 + $0x1b0] ss:$36 sps:$4 sm:$0xff]   ;;  %v1468_v27 = vld [vmem:[#allocation2 + $0x1b8] ss:$36 sps:$4 sm:$0xff]   ;;  %v1471_v29 = vld [vmem:[#allocation2 + $0x204] ss:$36 sps:$4 sm:$0xff]  }
  0x1c   :  { %790 = vmatpush1.bf16.msra.mxu0 %v1443_v10  ;;  %861 = vmatpush1.bf16.msra.mxu1 %v1444_v11  ;;  %v1469_v28 = vld [vmem:[#allocation2 + $0x1fc] ss:$36 sps:$4 sm:$0xff]   ;;  %v1475_v32 = vld [vmem:[#allocation2 + $0x244] ss:$36 sps:$4 sm:$0xff]   ;;  %v1477_v33 = vld [vmem:[#allocation2 + $0x24c] ss:$36 sps:$4 sm:$0xff]  }
  0x1d   :  { %791 = vmatprep.subr.bf16.mxu0 %v1445_v12  ;;  %862 = vmatprep.subr.bf16.mxu1 %v1447_v13  ;;  %v1473_v30 = vld [vmem:[#allocation2 + $0x1f8] ss:$36 sps:$4 sm:$0xff]   ;;  %v1474_v31 = vld [vmem:[#allocation2 + $0x200] ss:$36 sps:$4 sm:$0xff]   ;;  %v30_v34 = vld [vmem:[%s2083_s0 + $0x8] sm:$0xff]  ;;  %vm744_vm0 = vcmask 457728  }
  0x1e   :  { %v32_v35 = vld [vmem:[%s2083_s0 + $0x18] sm:$0xff]  ;;  %v1479_v37 = vld [vmem:[#allocation2 + $0x240] ss:$36 sps:$4 sm:$0xff]   ;;  %v1480_v38 = vld [vmem:[#allocation2 + $0x248] ss:$36 sps:$4 sm:$0xff]   ;;  %vm757_vm1 = vcmask 1043456  }
  0x1f   :  { %v1645_v36 = vpack.c.bf16 %v32_v35, %v30_v34  ;;  %v1481_v39 = vld [vmem:[#allocation2 + $0x28c] ss:$36 sps:$4 sm:$0xff]   ;;  %v1483_v40 = vld [vmem:[#allocation2 + $0x294] ss:$36 sps:$4 sm:$0xff]   ;;  %v1489_v44 = vld [vmem:[#allocation2 + $0x2dc] ss:$36 sps:$4 sm:$0xff]  }
  0x20   :  { %792 = vmatpush1.bf16.msra.mxu0 %v1449_v14  ;;  %863 = vmatpush1.bf16.msra.mxu1 %v1450_v15  ;;  %v1485_v41 = vld [vmem:[#allocation2 + $0x288] ss:$36 sps:$4 sm:$0xff]   ;;  %v1486_v42 = vld [vmem:[#allocation2 + $0x290] ss:$36 sps:$4 sm:$0xff]   ;;  %v161_v45 = vld [vmem:[#allocation2 + $0x318] sm:$0xff]  ;;  %vm1204_vm2 = vcmask 654336  }
  0x21   :  { %793 = vmatprep.subr.bf16.mxu0 %v1451_v16  ;;  %864 = vmatprep.subr.bf16.mxu1 %v1453_v17  ;;  %v1487_v43 = vld [vmem:[#allocation2 + $0x2d4] ss:$36 sps:$4 sm:$0xff]   ;;  %v162_v46 = vld [vmem:[#allocation2 + $0x320] sm:$0xff]  ;;  %v1367_v49 = vcombine.high %v161_v45, %v161_v45  ;;  %v1366_v51 = vcombine.low %v161_v45, %v161_v45  ;;  %v34_v61 = vld [vmem:[%s2083_s0 + $0x28] sm:$0xff]  ;;  %vm1259_vm3 = vcmask 647168  }
  0x22   :  { %1376 = vmatprep.mubr.msk.bf16.mxu0 %vm744_vm0, %v1645_v36  ;;  %1381 = vmatprep.mubr.msk.bf16.mxu1 %vm744_vm0, %v1645_v36  ;;  %v1491_v47 = vld [vmem:[#allocation2 + $0x2d0] ss:$36 sps:$4 sm:$0xff]   ;;  %v1492_v48 = vld [vmem:[#allocation2 + $0x2d8] ss:$36 sps:$4 sm:$0xff]   ;;  %v1369_v50 = vcombine.high %v162_v46, %v162_v46  ;;  %v1368_v52 = vcombine.low %v162_v46, %v162_v46  ;;  %v29_v53 = vld [vmem:[%s2083_s0] sm:$0xff] }
  0x23   :  { %v31_v54 = vld [vmem:[%s2083_s0 + $0x10] sm:$0xff]  ;;  %v759_v56 = vsel %vm757_vm1, %v1366_v51, 0  ;;  %v1502_v58 = vld [vmem:[#allocation2 + $0x1c] ss:$36 sps:$4 sm:$0xff]   ;;  %v1508_v1 = vld [vmem:[#allocation2 + $0x64] ss:$36 sps:$4 sm:$0xff]  }
  0x24   :  { %794 = vmatpush1.bf16.msra.mxu0 %v1455_v18  ;;  %865 = vmatpush1.bf16.msra.mxu1 %v1456_v19  ;;  %v1499_v55 = vld [vmem:[#allocation2 + $0x14] ss:$36 sps:$4 sm:$0xff]   ;;  %v765_v57 = vsel %vm757_vm1, %v1368_v52, 0  ;;  %v1661_v59 = vpack.c.bf16 %v31_v54, %v29_v53  ;;  %v1505_v63 = vld [vmem:[#allocation2 + $0x5c] ss:$36 sps:$4 sm:$0xff]   ;;  %v38_v11 = vld [vmem:[%s2083_s0 + $0x48] sm:$0xff] }
  0x25   :  { %795 = vmatprep.subr.bf16.mxu0 %v1457_v20  ;;  %866 = vmatprep.subr.bf16.mxu1 %v1459_v21  ;;  %v1497_v60 = vld [vmem:[#allocation2 + $0x10] ss:$36 sps:$4 sm:$0xff]   ;;  %v1500_v62 = vld [vmem:[#allocation2 + $0x18] ss:$36 sps:$4 sm:$0xff]   ;;  %v1506_v4 = vld [vmem:[#allocation2 + $0x60] ss:$36 sps:$4 sm:$0xff]  }
  0x26   :  { %v36_v0 = vld [vmem:[%s2083_s0 + $0x38] sm:$0xff]  ;;  %v1511_v5 = vld [vmem:[#allocation2 + $0xa4] ss:$36 sps:$4 sm:$0xff]   ;;  %v35_v7 = vld [vmem:[%s2083_s0 + $0x30] sm:$0xff] }
  0x27   :  { %v1503_v2 = vld [vmem:[#allocation2 + $0x58] ss:$36 sps:$4 sm:$0xff]   ;;  %v1669_v3 = vpack.c.bf16 %v36_v0, %v34_v61  ;;  %v33_v6 = vld [vmem:[%s2083_s0 + $0x20] sm:$0xff]  ;;  %v1514_v8 = vld [vmem:[#allocation2 + $0xac] ss:$36 sps:$4 sm:$0xff]  }
  0x28   :  { %796 = vmatpush1.bf16.msra.mxu0 %v1461_v22  ;;  %867 = vmatpush1.bf16.msra.mxu1 %v1462_v23  ;;  %v1509_v9 = vld [vmem:[#allocation2 + $0xa0] ss:$36 sps:$4 sm:$0xff]   ;;  %v1683_v10 = vpack.c.bf16 %v35_v7, %v33_v6  ;;  %v40_v12 = vld [vmem:[%s2083_s0 + $0x58] sm:$0xff]  ;;  %v1512_v13 = vld [vmem:[#allocation2 + $0xa8] ss:$36 sps:$4 sm:$0xff]  }
  0x29   :  { %797 = vmatprep.subr.bf16.mxu0 %v1463_v24  ;;  %868 = vmatprep.subr.bf16.mxu1 %v1465_v25  ;;  %v1517_v14 = vld [vmem:[#allocation2 + $0xec] ss:$36 sps:$4 sm:$0xff]   ;;  %v1520_v15 = vld [vmem:[#allocation2 + $0xf4] ss:$36 sps:$4 sm:$0xff]   ;;  %v1691_v16 = vpack.c.bf16 %v40_v12, %v38_v11  ;;  %v37_v19 = vld [vmem:[%s2083_s0 + $0x40] sm:$0xff] }
  0x2a   :  { %v1515_v17 = vld [vmem:[#allocation2 + $0xe8] ss:$36 sps:$4 sm:$0xff]   ;;  %v1518_v18 = vld [vmem:[#allocation2 + $0xf0] ss:$36 sps:$4 sm:$0xff]   ;;  %v1526_v22 = vld [vmem:[#allocation2 + $0x13c] ss:$36 sps:$4 sm:$0xff]  }
  0x2b   :  { %v39_v20 = vld [vmem:[%s2083_s0 + $0x50] sm:$0xff]  ;;  %v42_v24 = vld [vmem:[%s2083_s0 + $0x68] sm:$0x1]  ;;  %v1533_v35 = vld [vmem:[#allocation2 + $0x1c0] ss:$36 sps:$4 sm:$0xff]  }
  0x2c   :  { %798 = vmatpush1.bf16.msra.mxu0 %v1467_v26  ;;  %869 = vmatpush1.bf16.msra.mxu1 %v1468_v27  ;;  %v1523_v21 = vld [vmem:[#allocation2 + $0x134] ss:$36 sps:$4 sm:$0xff]   ;;  %v1705_v23 = vpack.c.bf16 %v39_v20, %v37_v19  ;;  %v1529_v27 = vld [vmem:[#allocation2 + $0x17c] ss:$36 sps:$4 sm:$0xff]   ;;  %v1538_v34 = vld [vmem:[#allocation2 + $0x1cc] ss:$36 sps:$4 sm:$0xff]  }
  0x2d   :  { %799 = vmatprep.subr.bf16.mxu0 %v1469_v28  ;;  %870 = vmatprep.subr.bf16.mxu1 %v1471_v29  ;;  %v1521_v25 = vld [vmem:[#allocation2 + $0x130] ss:$36 sps:$4 sm:$0xff]   ;;  %v1524_v26 = vld [vmem:[#allocation2 + $0x138] ss:$36 sps:$4 sm:$0xff]   ;;  %v1532_v28 = vld [vmem:[#allocation2 + $0x184] ss:$36 sps:$4 sm:$0xff]  }
  0x2e   :  { %v1527_v29 = vld [vmem:[#allocation2 + $0x178] ss:$36 sps:$4 sm:$0xff]   ;;  %v1545_v45 = vld [vmem:[#allocation2 + $0x250] ss:$36 sps:$4 sm:$0xff]   ;;  %v1559_v51 = vld [vmem:[#allocation2 + $0x2e4] ss:$36 sps:$4 sm:$0xff]  }
  0x2f   :  { %v1548_v46 = vld [vmem:[#allocation2 + $0x258] ss:$36 sps:$4 sm:$0xff]   ;;  %v1562_v52 = vld [vmem:[#allocation2 + $0x2ec] ss:$36 sps:$4 sm:$0xff]   ;;  %v1567_v0 = vld [vmem:[#allocation2 + $0x20] ss:$36 sps:$4 sm:$0xff]  }
  0x30   :  { %800 = vmatpush1.bf16.msra.mxu0 %v1473_v30  ;;  %871 = vmatpush1.bf16.msra.mxu1 %v1474_v31  ;;  %v1710_v30 = vpack.c.bf16 %v42_v24, %v42_v24  ;;  %v1530_v31 = vld [vmem:[#allocation2 + $0x180] ss:$36 sps:$4 sm:$0xff]   ;;  %v163_v53 = vld [vmem:[#allocation2 + $0x328] sm:$0xff]  ;;  %v164_v54 = vld [vmem:[#allocation2 + $0x330] sm:$0xff] }
  0x31   :  { %801 = vmatprep.subr.bf16.mxu0 %v1475_v32  ;;  %872 = vmatprep.subr.bf16.mxu1 %v1477_v33  ;;  %v1535_v32 = vld [vmem:[#allocation2 + $0x1c4] ss:$36 sps:$4 sm:$0xff]   ;;  %v41_v33 = vld [vmem:[%s2083_s0 + $0x60] sm:$0x1]  ;;  %v1372_v61 = vcombine.low %v164_v54, %v164_v54 }
  0x32   :  { %v1571_v6 = vld [vmem:[#allocation2 + $0x140] ss:$36 sps:$4 sm:$0xff]   ;;  %v1572_v7 = vld [vmem:[#allocation2 + $0x188] ss:$36 sps:$4 sm:$0xff]  }
  0x33   :  { %v1575_v11 = vld [vmem:[#allocation2 + $0x260] ss:$36 sps:$4 sm:$0xff]   ;;  %v1576_v12 = vld [vmem:[#allocation2 + $0x2a8] ss:$36 sps:$4 sm:$0xff]  }
  0x34   :  { %802 = vmatpush1.bf16.msra.mxu0 %v1479_v37  ;;  %873 = vmatpush1.bf16.msra.mxu1 %v1480_v38  ;;  %v1536_v37 = vld [vmem:[#allocation2 + $0x1c8] ss:$36 sps:$4 sm:$0xff]   ;;  %v1721_v38 = vpack.c.bf16 %v41_v33, %v41_v33 }
  0x35   :  { %803 = vmatprep.subr.bf16.mxu0 %v1481_v39  ;;  %874 = vmatprep.subr.bf16.mxu1 %v1483_v40  ;;  %v1541_v39 = vld [vmem:[#allocation2 + $0x20c] ss:$36 sps:$4 sm:$0xff]   ;;  %v1544_v40 = vld [vmem:[#allocation2 + $0x214] ss:$36 sps:$4 sm:$0xff]  }
  0x38   :  { %804 = vmatpush1.bf16.msra.mxu0 %v1485_v41  ;;  %875 = vmatpush1.bf16.msra.mxu1 %v1486_v42  ;;  %v1539_v41 = vld [vmem:[#allocation2 + $0x208] ss:$36 sps:$4 sm:$0xff]   ;;  %v1542_v42 = vld [vmem:[#allocation2 + $0x210] ss:$36 sps:$4 sm:$0xff]  }
  0x39   :  { %805 = vmatprep.subr.bf16.mxu0 %v1487_v43  ;;  %876 = vmatprep.subr.bf16.mxu1 %v1489_v44  ;;  %v1547_v43 = vld [vmem:[#allocation2 + $0x254] ss:$36 sps:$4 sm:$0xff]   ;;  %v1550_v44 = vld [vmem:[#allocation2 + $0x25c] ss:$36 sps:$4 sm:$0xff]  }
  0x3c   :  { %806 = vmatpush1.bf16.msra.mxu0 %v1491_v47  ;;  %877 = vmatpush1.bf16.msra.mxu1 %v1492_v48  ;;  %v1553_v47 = vld [vmem:[#allocation2 + $0x29c] ss:$36 sps:$4 sm:$0xff]   ;;  %v1556_v48 = vld [vmem:[#allocation2 + $0x2a4] ss:$36 sps:$4 sm:$0xff]  }
  0x3d   :  { %1375 = vmatprep.subr.msk.bf16.mxu0 %vm757_vm1, %v1367_v49  ;;  %1380 = vmatprep.subr.msk.bf16.mxu1 %vm757_vm1, %v1369_v50  ;;  %v1551_v49 = vld [vmem:[#allocation2 + $0x298] ss:$36 sps:$4 sm:$0xff]   ;;  %v1554_v50 = vld [vmem:[#allocation2 + $0x2a0] ss:$36 sps:$4 sm:$0xff]  }
  0x40   :  { %808 = vmatpush1.bf16.msra.mxu0 %v759_v56  ;;  %879 = vmatpush1.bf16.msra.mxu1 %v765_v57  ;;  %v1560_v56 = vld [vmem:[#allocation2 + $0x2e8] ss:$36 sps:$4 sm:$0xff]   ;;  %v1371_v57 = vcombine.high %v163_v53, %v163_v53 }
  0x41   :  { %927 = vmatprep.subr.bf16.mxu0 %v1499_v55  ;;  %998 = vmatprep.subr.bf16.mxu1 %v1502_v58  ;;  %v1557_v55 = vld [vmem:[#allocation2 + $0x2e0] ss:$36 sps:$4 sm:$0xff]   ;;  %v1373_v58 = vcombine.high %v164_v54, %v164_v54 }
  0x43   :  { %818 = vmatmul.mubr.bf16.vlgmr.msra.gmra.mrb[0].mxu0 %v1661_v59  ;;  %889 = vmatmul.mubr.bf16.vlgmr.msra.gmra.mrb[0].mxu1 %v1661_v59 }
  0x44   :  { %928 = vmatpush1.bf16.msra.mxu0 %v1497_v60  ;;  %999 = vmatpush1.bf16.msra.mxu1 %v1500_v62  ;;  %v1370_v60 = vcombine.low %v163_v53, %v163_v53 }
  0x45   :  { %929 = vmatprep.subr.bf16.mxu0 %v1505_v63  ;;  %1000 = vmatprep.subr.bf16.mxu1 %v1508_v1  ;;  %v777_v63 = vsel %vm757_vm1, %v1372_v61, 0  ;;  %v1606_v1 = vmov 0  }
  0x46   :  { %1377 = vmatprep.mubr.msk.bf16.mxu0 %vm744_vm0, %v1669_v3  ;;  %1382 = vmatprep.mubr.msk.bf16.mxu1 %vm744_vm0, %v1669_v3  ;;  %v771_v62 = vsel %vm757_vm1, %v1370_v60, 0 }
  0x48   :  { %930 = vmatpush1.bf16.msra.mxu0 %v1503_v2  ;;  %1001 = vmatpush1.bf16.msra.mxu1 %v1506_v4  ;;  %v1568_v2 = vld [vmem:[#allocation2 + $0x68] ss:$36 sps:$4 sm:$0xff]   ;;  %v1569_v4 = vld [vmem:[#allocation2 + $0xb0] ss:$36 sps:$4 sm:$0xff]  }
  0x49   :  { %931 = vmatprep.subr.bf16.mxu0 %v1511_v5  ;;  %1002 = vmatprep.subr.bf16.mxu1 %v1514_v8  ;;  %v1570_v5 = vld [vmem:[#allocation2 + $0xf8] ss:$36 sps:$4 sm:$0xff]   ;;  %v1573_v8 = vld [vmem:[#allocation2 + $0x1d0] ss:$36 sps:$4 sm:$0xff]  }
  0x4b   :  { %828 = vmatmul.mubr.bf16.gmra.mrb[4].mxu0 %v1683_v10  ;;  %899 = vmatmul.mubr.bf16.gmra.mrb[4].mxu1 %v1683_v10 }
  0x4c   :  { %932 = vmatpush1.bf16.msra.mxu0 %v1509_v9  ;;  %1003 = vmatpush1.bf16.msra.mxu1 %v1512_v13  ;;  %v1574_v9 = vld [vmem:[#allocation2 + $0x218] ss:$36 sps:$4 sm:$0xff]  }
  0x4d   :  { %933 = vmatprep.subr.bf16.mxu0 %v1517_v14  ;;  %1004 = vmatprep.subr.bf16.mxu1 %v1520_v15  ;;  %v1578_v13 = vld [vmem:[#allocation2 + $0x338] ss:$0 sps:$4 sm:$0xff]   ;;  %v170_v15 = vlaneseq }
  0x4e   :  { %1378 = vmatprep.mubr.msk.bf16.mxu0 %vm744_vm0, %v1691_v16  ;;  %1383 = vmatprep.mubr.msk.bf16.mxu1 %vm744_vm0, %v1691_v16  ;;  %v783_v14 = vsel %vm757_vm1, %v1578_v13, 0 }
  0x50   :  { %934 = vmatpush1.bf16.msra.mxu0 %v1515_v17  ;;  %1005 = vmatpush1.bf16.msra.mxu1 %v1518_v18 }
  0x51   :  { %935 = vmatprep.subr.bf16.mxu0 %v1523_v21  ;;  %1006 = vmatprep.subr.bf16.mxu1 %v1526_v22 }
  0x53   :  { %838 = vmatmul.mubr.bf16.gmra.mrb[8].mxu0 %v1705_v23  ;;  %909 = vmatmul.mubr.bf16.gmra.mrb[8].mxu1 %v1705_v23 }
  0x54   :  { %936 = vmatpush1.bf16.msra.mxu0 %v1521_v25  ;;  %1007 = vmatpush1.bf16.msra.mxu1 %v1524_v26 }
  0x55   :  { %937 = vmatprep.subr.bf16.mxu0 %v1529_v27  ;;  %1008 = vmatprep.subr.bf16.mxu1 %v1532_v28 }
  0x56   :  { %1379 = vmatprep.mubr.msk.bf16.mxu0 %vm744_vm0, %v1710_v30  ;;  %1384 = vmatprep.mubr.msk.bf16.mxu1 %vm744_vm0, %v1710_v30 }
  0x58   :  { %938 = vmatpush1.bf16.msra.mxu0 %v1527_v29  ;;  %1009 = vmatpush1.bf16.msra.mxu1 %v1530_v31 }
  0x59   :  { %939 = vmatprep.subr.bf16.mxu0 %v1535_v32  ;;  %1010 = vmatprep.subr.bf16.mxu1 %v1538_v34 }
  0x5b   :  { %848 = vmatmul.mubr.bf16.gmra.mrb[12].mxu0 %v1721_v38  ;;  %919 = vmatmul.mubr.bf16.gmra.mrb[12].mxu1 %v1721_v38 }
  0x5c   :  { %940 = vmatpush1.bf16.msra.mxu0 %v1533_v35  ;;  %1011 = vmatpush1.bf16.msra.mxu1 %v1536_v37 }
  0x5d   :  { %941 = vmatprep.subr.bf16.mxu0 %v1541_v39  ;;  %1012 = vmatprep.subr.bf16.mxu1 %v1544_v40 }
  0x5e   :  { %1386 = vmatprep.mubr.msk.bf16.mxu0 %vm744_vm0, %v1645_v36  ;;  %1391 = vmatprep.mubr.msk.bf16.mxu1 %vm744_vm0, %v1645_v36 }
  0x60   :  { %942 = vmatpush1.bf16.msra.mxu0 %v1539_v41  ;;  %1013 = vmatpush1.bf16.msra.mxu1 %v1542_v42 }
  0x61   :  { %943 = vmatprep.subr.bf16.mxu0 %v1547_v43  ;;  %1014 = vmatprep.subr.bf16.mxu1 %v1550_v44 }
  0x64   :  { %944 = vmatpush1.bf16.msra.mxu0 %v1545_v45  ;;  %1015 = vmatpush1.bf16.msra.mxu1 %v1548_v46 }
  0x65   :  { %945 = vmatprep.subr.bf16.mxu0 %v1553_v47  ;;  %1016 = vmatprep.subr.bf16.mxu1 %v1556_v48 }
  0x68   :  { %946 = vmatpush1.bf16.msra.mxu0 %v1551_v49  ;;  %1017 = vmatpush1.bf16.msra.mxu1 %v1554_v50 }
  0x69   :  { %947 = vmatprep.subr.bf16.mxu0 %v1559_v51  ;;  %1018 = vmatprep.subr.bf16.mxu1 %v1562_v52 }
  0x6c   :  { %948 = vmatpush1.bf16.msra.mxu0 %v1557_v55  ;;  %1019 = vmatpush1.bf16.msra.mxu1 %v1560_v56 }
  0x6d   :  { %1385 = vmatprep.subr.msk.bf16.mxu0 %vm757_vm1, %v1371_v57  ;;  %1390 = vmatprep.subr.msk.bf16.mxu1 %vm757_vm1, %v1373_v58 }
  0x70   :  { %950 = vmatpush1.bf16.msra.mxu0 %v771_v62  ;;  %1021 = vmatpush1.bf16.msra.mxu1 %v777_v63 }
  0x71   :  { %1069 = vmatprep.subr.bf16.mxu0 %v1606_v1  ;;  %1399 = vmatprep.subr.bf16.mxu1 %v1606_v1 }
  0x73   :  { %960 = vmatmul.mubr.bf16.vlgmr.msra.gmra.mrb[16].mxu0 %v1661_v59  ;;  %1031 = vmatmul.mubr.bf16.vlgmr.msra.gmra.mrb[16].mxu1 %v1661_v59 }
  0x74   :  { %1070 = vmatpush1.bf16.msra.mxu0 %v1567_v0  ;;  %1411 = vmatpush1.bf16.msra.mxu1 %v1567_v0 }
  0x75   :  { %1071 = vmatprep.subr.bf16.mxu0 %v1606_v1  ;;  %1400 = vmatprep.subr.bf16.mxu1 %v1606_v1 }
  0x76   :  { %1387 = vmatprep.mubr.msk.bf16.mxu0 %vm744_vm0, %v1669_v3  ;;  %1392 = vmatprep.mubr.msk.bf16.mxu1 %vm744_vm0, %v1669_v3 }
  0x78   :  { %1072 = vmatpush1.bf16.msra.mxu0 %v1568_v2  ;;  %1412 = vmatpush1.bf16.msra.mxu1 %v1568_v2 }
  0x79   :  { %1073 = vmatprep.subr.bf16.mxu0 %v1606_v1  ;;  %1401 = vmatprep.subr.bf16.mxu1 %v1606_v1 }
  0x7b   :  { %970 = vmatmul.mubr.bf16.gmra.mrb[20].mxu0 %v1683_v10  ;;  %1041 = vmatmul.mubr.bf16.gmra.mrb[20].mxu1 %v1683_v10 }
  0x7c   :  { %1074 = vmatpush1.bf16.msra.mxu0 %v1569_v4  ;;  %1413 = vmatpush1.bf16.msra.mxu1 %v1569_v4 }
  0x7d   :  { %1075 = vmatprep.subr.bf16.mxu0 %v1606_v1  ;;  %1402 = vmatprep.subr.bf16.mxu1 %v1606_v1 }
  0x7e   :  { %1388 = vmatprep.mubr.msk.bf16.mxu0 %vm744_vm0, %v1691_v16  ;;  %1393 = vmatprep.mubr.msk.bf16.mxu1 %vm744_vm0, %v1691_v16 }
  0x80   :  { %1076 = vmatpush1.bf16.msra.mxu0 %v1570_v5  ;;  %1414 = vmatpush1.bf16.msra.mxu1 %v1570_v5 }
  0x81   :  { %1077 = vmatprep.subr.bf16.mxu0 %v1606_v1  ;;  %1403 = vmatprep.subr.bf16.mxu1 %v1606_v1 }
  0x83   :  { %980 = vmatmul.mubr.bf16.gmra.mrb[24].mxu0 %v1705_v23  ;;  %1051 = vmatmul.mubr.bf16.gmra.mrb[24].mxu1 %v1705_v23 }
  0x84   :  { %1078 = vmatpush1.bf16.msra.mxu0 %v1571_v6  ;;  %1415 = vmatpush1.bf16.msra.mxu1 %v1571_v6 }
  0x85   :  { %1079 = vmatprep.subr.bf16.mxu0 %v1606_v1  ;;  %1404 = vmatprep.subr.bf16.mxu1 %v1606_v1 }
  0x86   :  { %1389 = vmatprep.mubr.msk.bf16.mxu0 %vm744_vm0, %v1710_v30  ;;  %1394 = vmatprep.mubr.msk.bf16.mxu1 %vm744_vm0, %v1710_v30 }
  0x88   :  { %1080 = vmatpush1.bf16.msra.mxu0 %v1572_v7  ;;  %1416 = vmatpush1.bf16.msra.mxu1 %v1572_v7 }
  0x89   :  { %1081 = vmatprep.subr.bf16.mxu0 %v1606_v1  ;;  %1405 = vmatprep.subr.bf16.mxu1 %v1606_v1 }
  0x8b   :  { %990 = vmatmul.mubr.bf16.gmra.mrb[28].mxu0 %v1721_v38  ;;  %1061 = vmatmul.mubr.bf16.gmra.mrb[28].mxu1 %v1721_v38 }
  0x8c   :  { %1082 = vmatpush1.bf16.msra.mxu0 %v1573_v8  ;;  %1417 = vmatpush1.bf16.msra.mxu1 %v1573_v8 }
  0x8d   :  { %1083 = vmatprep.subr.bf16.mxu0 %v1606_v1  ;;  %1406 = vmatprep.subr.bf16.mxu1 %v1606_v1 }
  0x8e   :  { %1395 = vmatprep.mubr.msk.bf16.mxu0 %vm744_vm0, %v1645_v36  ;;  %1397 = vmatprep.mubr.msk.bf16.mxu1 %vm744_vm0, %v1691_v16  ;;  %v1577_v36 = vld [vmem:[#allocation2 + $0x2f0] ss:$36 sps:$4 sm:$0xff]   ;;  %v1790_v16 = vshrl.u32 %v170_v15, 7 }
  0x90   :  { %1084 = vmatpush1.bf16.msra.mxu0 %v1574_v9  ;;  %1418 = vmatpush1.bf16.msra.mxu1 %v1574_v9  ;;  %v172_v17 = vsub.s32 0, %v1790_v16  ;;  %v180_v18 = vsub.s32 2, %v1790_v16  ;;  %v184_v19 = vsub.s32 3, %v1790_v16 }
  0x91   :  { %1085 = vmatprep.subr.bf16.mxu0 %v1606_v1  ;;  %1407 = vmatprep.subr.bf16.mxu1 %v1606_v1 }
  0x94   :  { %1086 = vmatpush1.bf16.msra.mxu0 %v1575_v11  ;;  %1419 = vmatpush1.bf16.msra.mxu1 %v1575_v11 }
  0x95   :  { %1087 = vmatprep.subr.bf16.mxu0 %v1606_v1  ;;  %1408 = vmatprep.subr.bf16.mxu1 %v1606_v1 }
  0x98   :  { %1088 = vmatpush1.bf16.msra.mxu0 %v1576_v12  ;;  %1420 = vmatpush1.bf16.msra.mxu1 %v1576_v12 }
  0x99   :  { %1089 = vmatprep.subr.bf16.mxu0 %v1606_v1  ;;  %1409 = vmatprep.subr.bf16.mxu1 %v1606_v1 }
  0x9c   :  { %1090 = vmatpush1.bf16.msra.mxu0 %v1577_v36  ;;  %1421 = vmatpush1.bf16.msra.mxu1 %v1577_v36 }
  0x9d   :  { %1091 = vmatprep.subr.bf16.mxu0 %v1606_v1  ;;  %1410 = vmatprep.subr.bf16.mxu1 %v1606_v1 }
  0xa0   :  { %1092 = vmatpush1.bf16.msra.mxu0 %v783_v14  ;;  %1422 = vmatpush1.bf16.msra.mxu1 %v783_v14 }
  0xa3   :  { %1102 = vmatmul.mubr.bf16.vlgmr.msra.gmra.mrb[32].mxu0 %v1661_v59  ;;  %1118 = vmatmul.mubr.bf16.vlgmr.msra.gmra.mrb[32].mxu1 %v1705_v23  ;;  %v1797_v59 = vld [vmem:[%s2085_s2] sm:$0xff] }
  0xa4   :  { %1396 = vmatprep.mubr.msk.bf16.mxu0 %vm744_vm0, %v1669_v3  ;;  %1398 = vmatprep.mubr.msk.bf16.mxu1 %vm744_vm0, %v1710_v30  ;;  %v176_v3 = vsub.s32 1, %v1790_v16  ;;  %v1805_v20 = vrot.slane %v1797_v59, %v180_v18  ;;  %v1811_v22 = vrot.slane %v1797_v59, %v184_v19 }
  0xa6   :  { %v1808_v21 = vrot.slane %v1797_v59, %v176_v3 }
  0xab   :  { %1110 = vmatmul.mubr.bf16.gmra.mrb[36].mxu0 %v1683_v10  ;;  %1126 = vmatmul.mubr.bf16.gmra.mrb[36].mxu1 %v1721_v38  ;;  %v1802_v10 = vrot.slane %v1797_v59, %v172_v17 }
 0x116   :  { %v819_v23 = vpop.f32.mrb[0].mxu0  ;;  %v890_v24 = vpop.f32.mrb[0].mxu1 }
 0x117   :  { %v820_v25 = vadd.f32 %v819_v23, %v1802_v10  ;;  %v891_v26 = vadd.f32 %v890_v24, %v1805_v20  ;;  %v821_v27 = vpop.f32.mrb[1].mxu0  ;;  %v892_v28 = vpop.f32.mrb[1].mxu1 }
 0x118   :  { %v822_v29 = vadd.f32 %v821_v27, %v1808_v21  ;;  %v893_v30 = vadd.f32 %v892_v28, %v1811_v22  ;;  %v823_v31 = vpop.f32.mrb[2].mxu0  ;;  %v894_v32 = vpop.f32.mrb[2].mxu1 }
 0x119   :  { %v1133_v33 = vmax.f32 %v820_v25, 0.0  ;;  %v1135_v34 = vmax.f32 %v891_v26, 0.0  ;;  %v824_v35 = vadd.f32 %v823_v31, %v1802_v10  ;;  %v895_v37 = vadd.f32 %v894_v32, %v1805_v20  ;;  %v825_v38 = vpop.f32.mrb[3].mxu0  ;;  %v896_v39 = vpop.f32.mrb[3].mxu1 }
 0x11a   :  { %v1134_v40 = vmax.f32 %v822_v29, 0.0  ;;  %v1136_v41 = vmax.f32 %v893_v30, 0.0  ;;  %v826_v42 = vadd.f32 %v825_v38, %v1808_v21  ;;  %v897_v43 = vadd.f32 %v896_v39, %v1811_v22 }
 0x11b   :  { %1196 = vst [vmem:[%s2086_s3] sm:$0xff] %v1133_v33  ;;  %1198 = vst [vmem:[%s2086_s3 + $0x10] sm:$0xff] %v1135_v34  ;;  %v1142_v44 = vmax.f32 %v824_v35, 0.0  ;;  %v1144_v45 = vmax.f32 %v895_v37, 0.0 }
 0x11c   :  { %1197 = vst [vmem:[%s2086_s3 + $0x8] sm:$0xff] %v1134_v40  ;;  %1199 = vst [vmem:[%s2086_s3 + $0x18] sm:$0xff] %v1136_v41  ;;  %v1143_v46 = vmax.f32 %v826_v42, 0.0  ;;  %v1145_v47 = vmax.f32 %v897_v43, 0.0 }
 0x11d   :  { %1206 = vst [vmem:[%s2086_s3 + $0x48] sm:$0xff] %v1142_v44  ;;  %1208 = vst [vmem:[%s2086_s3 + $0x58] sm:$0xff] %v1144_v45 }
 0x11e   :  { %1207 = vst [vmem:[%s2086_s3 + $0x50] sm:$0xff] %v1143_v46  ;;  %1209 = vst [vmem:[%s2086_s3 + $0x60] sm:$0xff] %v1145_v47  ;;  %v829_v48 = vpop.f32.mrb[4].mxu0  ;;  %v900_v49 = vpop.f32.mrb[4].mxu1 }
 0x11f   :  { %v830_v50 = vadd.f32 %v829_v48, %v1802_v10  ;;  %v831_v51 = vpop.f32.mrb[5].mxu0  ;;  %v901_v52 = vadd.f32 %v900_v49, %v1805_v20  ;;  %v902_v53 = vpop.f32.mrb[5].mxu1 }
 0x120   :  { %v832_v54 = vadd.f32 %v831_v51, %v1808_v21  ;;  %v833_v55 = vpop.f32.mrb[6].mxu0  ;;  %v903_v56 = vadd.f32 %v902_v53, %v1811_v22  ;;  %v904_v57 = vpop.f32.mrb[6].mxu1 }
 0x121   :  { %v1151_v58 = vmax.f32 %v830_v50, 0.0  ;;  %v834_v60 = vadd.f32 %v833_v55, %v1802_v10  ;;  %v1153_v61 = vmax.f32 %v901_v52, 0.0  ;;  %v835_v62 = vpop.f32.mrb[7].mxu0  ;;  %v905_v63 = vadd.f32 %v904_v57, %v1805_v20  ;;  %v906_v0 = vpop.f32.mrb[7].mxu1 }
 0x122   :  { %v1152_v1 = vmax.f32 %v832_v54, 0.0  ;;  %v836_v2 = vadd.f32 %v835_v62, %v1808_v21  ;;  %v1154_v4 = vmax.f32 %v903_v56, 0.0  ;;  %v907_v5 = vadd.f32 %v906_v0, %v1811_v22 }
 0x123   :  { %1215 = vst [vmem:[%s2086_s3 + $0x90] sm:$0xff] %v1151_v58  ;;  %v1160_v6 = vmax.f32 %v834_v60, 0.0  ;;  %1217 = vst [vmem:[%s2086_s3 + $0xa0] sm:$0xff] %v1153_v61  ;;  %v1162_v7 = vmax.f32 %v905_v63, 0.0 }
 0x124   :  { %1216 = vst [vmem:[%s2086_s3 + $0x98] sm:$0xff] %v1152_v1  ;;  %v1161_v8 = vmax.f32 %v836_v2, 0.0  ;;  %1218 = vst [vmem:[%s2086_s3 + $0xa8] sm:$0xff] %v1154_v4  ;;  %v1163_v9 = vmax.f32 %v907_v5, 0.0 }
 0x125   :  { %1224 = vst [vmem:[%s2086_s3 + $0xd8] sm:$0xff] %v1160_v6  ;;  %1226 = vst [vmem:[%s2086_s3 + $0xe8] sm:$0xff] %v1162_v7 }
 0x126   :  { %1225 = vst [vmem:[%s2086_s3 + $0xe0] sm:$0xff] %v1161_v8  ;;  %1227 = vst [vmem:[%s2086_s3 + $0xf0] sm:$0xff] %v1163_v9  ;;  %v839_v11 = vpop.f32.mrb[8].mxu0  ;;  %v910_v12 = vpop.f32.mrb[8].mxu1 }
 0x127   :  { %v840_v36 = vadd.f32 %v839_v11, %v1802_v10  ;;  %v841_v13 = vpop.f32.mrb[9].mxu0  ;;  %v911_v14 = vadd.f32 %v910_v12, %v1805_v20  ;;  %v912_v15 = vpop.f32.mrb[9].mxu1 }
 0x128   :  { %v842_v17 = vadd.f32 %v841_v13, %v1808_v21  ;;  %v843_v18 = vpop.f32.mrb[10].mxu0  ;;  %v913_v3 = vadd.f32 %v912_v15, %v1811_v22  ;;  %v914_v19 = vpop.f32.mrb[10].mxu1 }
 0x129   :  { %v1169_v23 = vmax.f32 %v840_v36, 0.0  ;;  %v844_v24 = vadd.f32 %v843_v18, %v1802_v10  ;;  %v1171_v25 = vmax.f32 %v911_v14, 0.0  ;;  %v845_v26 = vpop.f32.mrb[11].mxu0  ;;  %v915_v27 = vadd.f32 %v914_v19, %v1805_v20  ;;  %v916_v28 = vpop.f32.mrb[11].mxu1 }
 0x12a   :  { %v1170_v29 = vmax.f32 %v842_v17, 0.0  ;;  %v846_v30 = vadd.f32 %v845_v26, %v1808_v21  ;;  %v1172_v31 = vmax.f32 %v913_v3, 0.0  ;;  %v917_v32 = vadd.f32 %v916_v28, %v1811_v22 }
 0x12b   :  { %1233 = vst [vmem:[%s2086_s3 + $0x120] sm:$0xff] %v1169_v23  ;;  %v1178_v33 = vmax.f32 %v844_v24, 0.0  ;;  %1235 = vst [vmem:[%s2086_s3 + $0x130] sm:$0xff] %v1171_v25  ;;  %v1180_v34 = vmax.f32 %v915_v27, 0.0 }
 0x12c   :  { %1234 = vst [vmem:[%s2086_s3 + $0x128] sm:$0xff] %v1170_v29  ;;  %v1179_v35 = vmax.f32 %v846_v30, 0.0  ;;  %1236 = vst [vmem:[%s2086_s3 + $0x138] sm:$0xff] %v1172_v31  ;;  %v1181_v37 = vmax.f32 %v917_v32, 0.0 }
 0x12d   :  { %1242 = vst [vmem:[%s2086_s3 + $0x168] sm:$0xff] %v1178_v33  ;;  %1244 = vst [vmem:[%s2086_s3 + $0x178] sm:$0xff] %v1180_v34 }
 0x12e   :  { %1243 = vst [vmem:[%s2086_s3 + $0x170] sm:$0xff] %v1179_v35  ;;  %1245 = vst [vmem:[%s2086_s3 + $0x180] sm:$0xff] %v1181_v37  ;;  %v849_v38 = vpop.f32.mrb[12].mxu0  ;;  %v920_v39 = vpop.f32.mrb[12].mxu1 }
 0x12f   :  { %v850_v40 = vadd.f32 %v849_v38, %v1802_v10  ;;  %v851_v41 = vpop.f32.mrb[13].mxu0  ;;  %v921_v42 = vadd.f32 %v920_v39, %v1805_v20  ;;  %v922_v43 = vpop.f32.mrb[13].mxu1  ;;  %v188_v10 = vsub.s32 4, %v1790_v16  ;;  %v196_v20 = vsub.s32 6, %v1790_v16 }
 0x130   :  { %v852_v44 = vadd.f32 %v851_v41, %v1808_v21  ;;  %v853_v45 = vpop.f32.mrb[14].mxu0  ;;  %v923_v46 = vadd.f32 %v922_v43, %v1811_v22  ;;  %v924_v47 = vpop.f32.mrb[14].mxu1  ;;  %v192_v21 = vsub.s32 5, %v1790_v16  ;;  %v200_v22 = vsub.s32 7, %v1790_v16 }
 0x131   :  { %v1187_v48 = vmax.f32 %v850_v40, 0.0  ;;  %v1189_v49 = vmax.f32 %v921_v42, 0.0  ;;  %v854_v50 = vpop.f32.mrb[15].mxu0  ;;  %v925_v51 = vpop.f32.mrb[15].mxu1  ;;  %v1930_v54 = vrot.slane %v1797_v59, %v188_v10  ;;  %v1933_v55 = vrot.slane %v1797_v59, %v196_v20 }
 0x132   :  { %v1188_v52 = vmax.f32 %v852_v44, 0.0  ;;  %v1190_v53 = vmax.f32 %v923_v46, 0.0  ;;  %v1936_v56 = vrot.slane %v1797_v59, %v192_v21  ;;  %v1939_v57 = vrot.slane %v1797_v59, %v200_v22 }
 0x133   :  { %1251 = vst [vmem:[%s2086_s3 + $0x1b0] sm:$0x1] %v1187_v48  ;;  %1253 = vst [vmem:[%s2086_s3 + $0x1c0] sm:$0x1] %v1189_v49 }
 0x134   :  { %1252 = vst [vmem:[%s2086_s3 + $0x1b8] sm:$0x1] %v1188_v52  ;;  %1254 = vst [vmem:[%s2086_s3 + $0x1c8] sm:$0x1] %v1190_v53 }
 0x146   :  { %v961_v58 = vpop.f32.mrb[16].mxu0  ;;  %v1032_v60 = vpop.f32.mrb[16].mxu1 }
 0x147   :  { %v962_v61 = vadd.f32 %v961_v58, %v1930_v54  ;;  %v1033_v62 = vadd.f32 %v1032_v60, %v1933_v55  ;;  %v963_v63 = vpop.f32.mrb[17].mxu0  ;;  %v1034_v16 = vpop.f32.mrb[17].mxu1 }
 0x148   :  { %v964_v0 = vadd.f32 %v963_v63, %v1936_v56  ;;  %v1035_v1 = vadd.f32 %v1034_v16, %v1939_v57  ;;  %v965_v2 = vpop.f32.mrb[18].mxu0  ;;  %v1036_v4 = vpop.f32.mrb[18].mxu1 }
 0x149   :  { %v1137_v5 = vmax.f32 %v962_v61, 0.0  ;;  %v1139_v6 = vmax.f32 %v1033_v62, 0.0  ;;  %v966_v7 = vadd.f32 %v965_v2, %v1930_v54  ;;  %v1037_v59 = vadd.f32 %v1036_v4, %v1933_v55  ;;  %v967_v8 = vpop.f32.mrb[19].mxu0  ;;  %v1038_v9 = vpop.f32.mrb[19].mxu1 }
 0x14a   :  { %v1138_v11 = vmax.f32 %v964_v0, 0.0  ;;  %v1140_v12 = vmax.f32 %v1035_v1, 0.0  ;;  %v968_v36 = vadd.f32 %v967_v8, %v1936_v56  ;;  %v1039_v13 = vadd.f32 %v1038_v9, %v1939_v57 }
 0x14b   :  { %1200 = vst [vmem:[%s2086_s3 + $0x20] sm:$0xff] %v1137_v5  ;;  %1202 = vst [vmem:[%s2086_s3 + $0x30] sm:$0xff] %v1139_v6  ;;  %v1146_v14 = vmax.f32 %v966_v7, 0.0  ;;  %v1148_v15 = vmax.f32 %v1037_v59, 0.0 }
 0x14c   :  { %1201 = vst [vmem:[%s2086_s3 + $0x28] sm:$0xff] %v1138_v11  ;;  %1203 = vst [vmem:[%s2086_s3 + $0x38] sm:$0xff] %v1140_v12  ;;  %v1147_v17 = vmax.f32 %v968_v36, 0.0  ;;  %v1149_v18 = vmax.f32 %v1039_v13, 0.0 }
 0x14d   :  { %1210 = vst [vmem:[%s2086_s3 + $0x68] sm:$0xff] %v1146_v14  ;;  %1212 = vst [vmem:[%s2086_s3 + $0x78] sm:$0xff] %v1148_v15 }
 0x14e   :  { %1211 = vst [vmem:[%s2086_s3 + $0x70] sm:$0xff] %v1147_v17  ;;  %1213 = vst [vmem:[%s2086_s3 + $0x80] sm:$0xff] %v1149_v18  ;;  %v971_v3 = vpop.f32.mrb[20].mxu0  ;;  %v1042_v19 = vpop.f32.mrb[20].mxu1 }
 0x14f   :  { %v972_v23 = vadd.f32 %v971_v3, %v1930_v54  ;;  %v973_v24 = vpop.f32.mrb[21].mxu0  ;;  %v1043_v25 = vadd.f32 %v1042_v19, %v1933_v55  ;;  %v1044_v26 = vpop.f32.mrb[21].mxu1 }
 0x150   :  { %v974_v27 = vadd.f32 %v973_v24, %v1936_v56  ;;  %v975_v28 = vpop.f32.mrb[22].mxu0  ;;  %v1045_v29 = vadd.f32 %v1044_v26, %v1939_v57  ;;  %v1046_v30 = vpop.f32.mrb[22].mxu1 }
 0x151   :  { %v1155_v31 = vmax.f32 %v972_v23, 0.0  ;;  %v976_v32 = vadd.f32 %v975_v28, %v1930_v54  ;;  %v1157_v33 = vmax.f32 %v1043_v25, 0.0  ;;  %v977_v34 = vpop.f32.mrb[23].mxu0  ;;  %v1047_v35 = vadd.f32 %v1046_v30, %v1933_v55  ;;  %v1048_v37 = vpop.f32.mrb[23].mxu1 }
 0x152   :  { %v1156_v38 = vmax.f32 %v974_v27, 0.0  ;;  %v978_v39 = vadd.f32 %v977_v34, %v1936_v56  ;;  %v1158_v40 = vmax.f32 %v1045_v29, 0.0  ;;  %v1049_v41 = vadd.f32 %v1048_v37, %v1939_v57 }
 0x153   :  { %1219 = vst [vmem:[%s2086_s3 + $0xb0] sm:$0xff] %v1155_v31  ;;  %v1164_v42 = vmax.f32 %v976_v32, 0.0  ;;  %1221 = vst [vmem:[%s2086_s3 + $0xc0] sm:$0xff] %v1157_v33  ;;  %v1166_v43 = vmax.f32 %v1047_v35, 0.0 }
 0x154   :  { %1220 = vst [vmem:[%s2086_s3 + $0xb8] sm:$0xff] %v1156_v38  ;;  %v1165_v44 = vmax.f32 %v978_v39, 0.0  ;;  %1222 = vst [vmem:[%s2086_s3 + $0xc8] sm:$0xff] %v1158_v40  ;;  %v1167_v45 = vmax.f32 %v1049_v41, 0.0 }
 0x155   :  { %1228 = vst [vmem:[%s2086_s3 + $0xf8] sm:$0xff] %v1164_v42  ;;  %1230 = vst [vmem:[%s2086_s3 + $0x108] sm:$0xff] %v1166_v43 }
 0x156   :  { %1229 = vst [vmem:[%s2086_s3 + $0x100] sm:$0xff] %v1165_v44  ;;  %1231 = vst [vmem:[%s2086_s3 + $0x110] sm:$0xff] %v1167_v45  ;;  %v981_v46 = vpop.f32.mrb[24].mxu0  ;;  %v1052_v47 = vpop.f32.mrb[24].mxu1 }
 0x157   :  { %v982_v48 = vadd.f32 %v981_v46, %v1930_v54  ;;  %v983_v49 = vpop.f32.mrb[25].mxu0  ;;  %v1053_v50 = vadd.f32 %v1052_v47, %v1933_v55  ;;  %v1054_v51 = vpop.f32.mrb[25].mxu1 }
 0x158   :  { %v984_v52 = vadd.f32 %v983_v49, %v1936_v56  ;;  %v985_v53 = vpop.f32.mrb[26].mxu0  ;;  %v1055_v10 = vadd.f32 %v1054_v51, %v1939_v57  ;;  %v1056_v20 = vpop.f32.mrb[26].mxu1 }
 0x159   :  { %v1173_v21 = vmax.f32 %v982_v48, 0.0  ;;  %v986_v22 = vadd.f32 %v985_v53, %v1930_v54  ;;  %v1175_v58 = vmax.f32 %v1053_v50, 0.0  ;;  %v987_v60 = vpop.f32.mrb[27].mxu0  ;;  %v1057_v61 = vadd.f32 %v1056_v20, %v1933_v55  ;;  %v1058_v62 = vpop.f32.mrb[27].mxu1 }
 0x15a   :  { %v1174_v63 = vmax.f32 %v984_v52, 0.0  ;;  %v988_v16 = vadd.f32 %v987_v60, %v1936_v56  ;;  %v1176_v0 = vmax.f32 %v1055_v10, 0.0  ;;  %v1059_v1 = vadd.f32 %v1058_v62, %v1939_v57 }
 0x15b   :  { %1237 = vst [vmem:[%s2086_s3 + $0x140] sm:$0xff] %v1173_v21  ;;  %v1182_v2 = vmax.f32 %v986_v22, 0.0  ;;  %1239 = vst [vmem:[%s2086_s3 + $0x150] sm:$0xff] %v1175_v58  ;;  %v1184_v4 = vmax.f32 %v1057_v61, 0.0 }
 0x15c   :  { %1238 = vst [vmem:[%s2086_s3 + $0x148] sm:$0xff] %v1174_v63  ;;  %v1183_v5 = vmax.f32 %v988_v16, 0.0  ;;  %1240 = vst [vmem:[%s2086_s3 + $0x158] sm:$0xff] %v1176_v0  ;;  %v1185_v6 = vmax.f32 %v1059_v1, 0.0 }
 0x15d   :  { %1246 = vst [vmem:[%s2086_s3 + $0x188] sm:$0xff] %v1182_v2  ;;  %1248 = vst [vmem:[%s2086_s3 + $0x198] sm:$0xff] %v1184_v4 }
 0x15e   :  { %1247 = vst [vmem:[%s2086_s3 + $0x190] sm:$0xff] %v1183_v5  ;;  %1249 = vst [vmem:[%s2086_s3 + $0x1a0] sm:$0xff] %v1185_v6  ;;  %v991_v7 = vpop.f32.mrb[28].mxu0  ;;  %v1062_v59 = vpop.f32.mrb[28].mxu1 }
 0x15f   :  { %v992_v8 = vadd.f32 %v991_v7, %v1930_v54  ;;  %v993_v9 = vpop.f32.mrb[29].mxu0  ;;  %v1063_v11 = vadd.f32 %v1062_v59, %v1933_v55  ;;  %v1064_v12 = vpop.f32.mrb[29].mxu1  ;;  %v1266_v54 = vld [vmem:[%s2085_s2 + $0x8] ss:$0 sm:$0xff] }
 0x160   :  { %v994_v36 = vadd.f32 %v993_v9, %v1936_v56  ;;  %v995_v13 = vpop.f32.mrb[30].mxu0  ;;  %v1065_v14 = vadd.f32 %v1064_v12, %v1939_v57  ;;  %v1066_v15 = vpop.f32.mrb[30].mxu1 }
 0x161   :  { %v1191_v17 = vmax.f32 %v992_v8, 0.0  ;;  %v1193_v18 = vmax.f32 %v1063_v11, 0.0  ;;  %v996_v3 = vpop.f32.mrb[31].mxu0  ;;  %v1067_v19 = vpop.f32.mrb[31].mxu1 }
 0x162   :  { %v1192_v23 = vmax.f32 %v994_v36, 0.0  ;;  %v1194_v24 = vmax.f32 %v1065_v14, 0.0 }
 0x163   :  { %1255 = vst [vmem:[%s2086_s3 + $0x1d0] sm:$0x1] %v1191_v17  ;;  %1257 = vst [vmem:[%s2086_s3 + $0x1e0] sm:$0x1] %v1193_v18 }
 0x164   :  { %1256 = vst [vmem:[%s2086_s3 + $0x1d8] sm:$0x1] %v1192_v23  ;;  %1258 = vst [vmem:[%s2086_s3 + $0x1e8] sm:$0x1] %v1194_v24 }
 0x176   :  { %v1103_v55 = vpop.f32.mrb[32].mxu0  ;;  %v1119_v56 = vpop.f32.mrb[32].mxu1 }
 0x177   :  { %v1104_v57 = vadd.f32 %v1266_v54, %v1103_v55  ;;  %v1120_v25 = vadd.f32 %v1266_v54, %v1119_v56  ;;  %v1105_v26 = vpop.f32.mrb[33].mxu0  ;;  %v1121_v27 = vpop.f32.mrb[33].mxu1 }
 0x178   :  { %v1106_v28 = vpop.f32.mrb[34].mxu0  ;;  %v1122_v29 = vpop.f32.mrb[34].mxu1 }
 0x179   :  { %v1141_v30 = vmax.f32 %v1104_v57, 0.0  ;;  %v1177_v31 = vmax.f32 %v1120_v25, 0.0  ;;  %v1107_v32 = vadd.f32 %v1266_v54, %v1106_v28  ;;  %v1123_v33 = vadd.f32 %v1266_v54, %v1122_v29  ;;  %v1108_v34 = vpop.f32.mrb[35].mxu0  ;;  %v1124_v35 = vpop.f32.mrb[35].mxu1 }
 0x17b   :  { %1205 = vst.msk [vmem:[%s2086_s3 + $0x40] sm:$0xff] %vm1204_vm2, %v1141_v30  ;;  %1241 = vst.msk [vmem:[%s2086_s3 + $0x160] sm:$0xff] %vm1204_vm2, %v1177_v31  ;;  %v1150_v37 = vmax.f32 %v1107_v32, 0.0  ;;  %v1186_v38 = vmax.f32 %v1123_v33, 0.0 }
 0x17d   :  { %1214 = vst.msk [vmem:[%s2086_s3 + $0x88] sm:$0xff] %vm1204_vm2, %v1150_v37  ;;  %1250 = vst.msk [vmem:[%s2086_s3 + $0x1a8] sm:$0xff] %vm1204_vm2, %v1186_v38 }
 0x17e   :  { %v1111_v39 = vpop.f32.mrb[36].mxu0  ;;  %v1127_v40 = vpop.f32.mrb[36].mxu1 }
 0x17f   :  { %v1112_v41 = vadd.f32 %v1266_v54, %v1111_v39  ;;  %v1128_v42 = vadd.f32 %v1266_v54, %v1127_v40  ;;  %v1113_v43 = vpop.f32.mrb[37].mxu0  ;;  %v1129_v44 = vpop.f32.mrb[37].mxu1 }
 0x180   :  { %v1114_v45 = vpop.f32.mrb[38].mxu0  ;;  %v1130_v46 = vpop.f32.mrb[38].mxu1 }
 0x181   :  { %v1159_v47 = vmax.f32 %v1112_v41, 0.0  ;;  %v1195_v48 = vmax.f32 %v1128_v42, 0.0  ;;  %v1115_v49 = vadd.f32 %v1266_v54, %v1114_v45  ;;  %v1116_v50 = vpop.f32.mrb[39].mxu0  ;;  %v1131_v51 = vpop.f32.mrb[39].mxu1 }
 0x183   :  { %1223 = vst.msk [vmem:[%s2086_s3 + $0xd0] sm:$0xff] %vm1204_vm2, %v1159_v47  ;;  %v1168_v52 = vmax.f32 %v1115_v49, 0.0 }
 0x184   :  { %1260 = vst.msk [vmem:[%s2086_s3 + $0x1f0] sm:$0x1] %vm1259_vm3, %v1195_v48 }
 0x185   :  { %1232 = vst.msk [vmem:[%s2086_s3 + $0x118] sm:$0xff] %vm1204_vm2, %v1168_v52 }
 0x186   :  { %1265 = vsyncpa [#allocation3], 1 }

</bundles_post_ra>
